<compile_context>
chip_gen: v5e
topology: v5e:2x2
jax: 0.10.0
libtpu: 0.0.40
codegen_flags: <defaults>
</compile_context>

<pallas_src>
import math

import jax
import jax.numpy as jnp
from jax.experimental import pallas as pl
from jax.experimental.pallas import tpu as pltpu


def _round_up(x, m):
    return (x + m - 1) // m * m


_VMEM_BUDGET = 46 << 20  # conservative: v7x has 64 MiB physical VMEM per TC


def _vmem_need(T, d_pad, itemsize, s_bufs=3):
    # im (2 bufs) + s (s_bufs) input panels, f32 score/exp temporaries, and the
    # f32 casts of the two panels on diagonal steps; outputs are negligible.
    return ((2 + s_bufs) * T * d_pad * itemsize
            + 2 * T * T * 4
            + 2 * T * d_pad * 4)


def _select_tile(B, d_pad, itemsize):
    # Largest lane-aligned tile that fits the VMEM budget.
    t_cap = 128
    for cand in (1024, 768, 512, 384, 256, 128):
        if _vmem_need(cand, d_pad, itemsize) <= _VMEM_BUDGET:
            t_cap = cand
            break
    if B <= 128:
        return 128
    # Split into at least two row blocks so the "parallel" i axis can be
    # sharded across v7x's two TensorCores.
    half = _round_up(-(-B // 2), 128)
    return min(t_cap, half)
    # TODO(synk): for very large D a k (feature) reduction grid axis would keep
    # T large on v7x without growing the per-step panels; not needed here.


def _uto_kernel(im_ref, s_ref, sum1_ref, sum0_ref, diag_ref):
    i = pl.program_id(0)          # row-block index ("parallel")
    j = pl.program_id(1)          # col-block index ("arbitrary" reduction)
    T = s_ref.shape[0]

    # scores = (alpha*im_blk) @ s_blk.T : contract the feature dim directly
    # (no in-kernel transpose of s), accumulate in f32 on the MXU.
    scores = jax.lax.dot_general(
        im_ref[...], s_ref[...],
        dimension_numbers=(((1,), (1,)), ((), ())),
        preferred_element_type=jnp.float32,
    )                                              # [T, T] f32
    S = jnp.exp(scores)                            # alpha / -alpha*ep folded outside

    # Row-sum accumulator lives in the resident output block across the j axis.
    @pl.when(j == 0)
    def _():
        sum1_ref[...] = jnp.zeros_like(sum1_ref)

    sum1_ref[...] += jnp.sum(S, axis=1, keepdims=True)          # [T, 1]

    # Column-sum partials: one resident, lane-dense [1, B_pad] block per row
    # block; each j step fills its 128-aligned [1, T] slice.
    col = pl.multiple_of(j * T, 128)
    sum0_ref[:, pl.ds(col, T)] = jnp.sum(S, axis=0, keepdims=True)

    # Diagonal of im_blk @ s_blk.T == row-wise dot of matching rows; only
    # needed on diagonal grid blocks.  (Sum corrections happen in the wrapper.)
    @pl.when(i == j)
    def _():
        prod = im_ref[...].astype(jnp.float32) * s_ref[...].astype(jnp.float32)
        diag_ref[...] = jnp.sum(prod, axis=1, keepdims=True)    # [T, 1] = alpha*diag


def _make_s_spec(T, d_pad, n_blk):
    idx = lambda i, j: (j, 0)
    if n_blk >= 3 and hasattr(pl, "Buffered"):
        try:
            # Deeper pipelining on the streamed s panel only.
            return pl.BlockSpec((T, d_pad), idx, pipeline_mode=pl.Buffered(3)), 3
        except TypeError:
            pass
    return pl.BlockSpec((T, d_pad), idx), 2


def uto_loss(im, s, *, mu=10.0, gama=0.2, compute_dtype=jnp.bfloat16):
    """Pallas implementation of UTO.forward(im, s); returns a scalar f32 loss.

    im, s: [B, D].  With compute_dtype=jnp.bfloat16 (default) the matmul runs
    at full MXU rate; pass compute_dtype=None to keep the input dtype.
    """
    assert im.ndim == 2 and im.shape == s.shape
    B, D = im.shape
    alpha, ep = float(mu), float(gama)
    exp_c = math.exp(-alpha * ep)

    cdt = jnp.dtype(im.dtype) if compute_dtype is None else jnp.dtype(compute_dtype)
    itemsize = cdt.itemsize

    d_pad = _round_up(D, 128)
    T = _select_tile(B, d_pad, itemsize)
    B_pad = _round_up(B, T)
    n_blk = B_pad // T
    pad_rows = B_pad - B

    # Fold alpha into im (fused by XLA with the cast + pad -> no extra HBM
    # pass).  Padding stays exactly zero, which the pad_corr below relies on.
    im_p = jnp.pad((im.astype(jnp.float32) * alpha).astype(cdt),
                   ((0, pad_rows), (0, d_pad - D)))
    s_p = jnp.pad(s.astype(cdt), ((0, pad_rows), (0, d_pad - D)))

    s_spec, s_bufs = _make_s_spec(T, d_pad, n_blk)

    vmem_limit = int(min(
        max(_vmem_need(T, d_pad, itemsize, s_bufs)
            + 2 * (B_pad + 2 * T) * 4 + (4 << 20), 32 << 20),
        64 << 20))

    sum1_o, sum0_o, diag_o = pl.pallas_call(
        _uto_kernel,
        out_shape=(
            jax.ShapeDtypeStruct((B_pad, 1), jnp.float32),          # row sums (no exp_c)
            jax.ShapeDtypeStruct((n_blk, 1, B_pad), jnp.float32),   # col-sum partials
            jax.ShapeDtypeStruct((B_pad, 1), jnp.float32),          # alpha * diag scores
        ),
        grid_spec=pltpu.PrefetchScalarGridSpec(
            num_scalar_prefetch=0,
            grid=(n_blk, n_blk),
            in_specs=[
                pl.BlockSpec((T, d_pad), lambda i, j: (i, 0)),      # im panel (resident over j)
                s_spec,                                             # s panel (streamed over j)
            ],
            out_specs=[
                pl.BlockSpec((T, 1), lambda i, j: (i, 0)),               # resident accumulator
                pl.BlockSpec((None, 1, B_pad), lambda i, j: (i, 0, 0)),  # resident, lane-dense
                pl.BlockSpec((T, 1), lambda i, j: (i, 0)),               # written at i == j
            ],
        ),
        compiler_params=pltpu.CompilerParams(
            dimension_semantics=("parallel", "arbitrary"),
            vmem_limit_bytes=vmem_limit,
        ),
        cost_estimate=pl.CostEstimate(
            flops=2 * B_pad * B_pad * d_pad + 2 * B_pad * d_pad,
            transcendentals=B_pad * B_pad,
            bytes_accessed=(1 + n_blk) * B_pad * d_pad * itemsize
            + (2 + n_blk) * B_pad * 4,
        ),
    )(im_p, s_p)

    # Epilogue in plain JAX: apply exp(-alpha*ep), replace the diagonal term of
    # each row/col sum with exp(-alpha*ep) (reference zeroes the diagonal of
    # scores), and remove padded-entry contributions (exp(-alpha*ep) each).
    diag_scaled = diag_o[:B, 0]                    # alpha * raw diagonal score
    d_exp = jnp.exp(diag_scaled)
    pad_corr = pad_rows * exp_c
    sum1 = exp_c * (sum1_o[:B, 0] + 1.0 - d_exp) - pad_corr
    sum0 = exp_c * (jnp.sum(sum0_o[:, 0, :], axis=0)[:B] + 1.0 - d_exp) - pad_corr
    diag_raw = diag_scaled * (1.0 / alpha)
    loss = (jnp.sum(jnp.log1p(sum1)) + jnp.sum(jnp.log1p(sum0))) * (1.0 / alpha) \
        - jnp.sum(jnp.log1p(jax.nn.relu(diag_raw)))
    return loss / B


def _uto_ref(im, s, *, mu=10.0, gama=0.2):
    # Pure-JAX reference mirroring the PyTorch code.
    B = im.shape[0]
    scores = im.astype(jnp.float32) @ s.astype(jnp.float32).T
    eye = jnp.eye(B, dtype=jnp.float32)
    s_diag = eye * scores
    scores_ = scores - s_diag
    S_ = jnp.exp(mu * (scores_ - gama))
    loss_diag_1 = -jnp.log(1.0 + jax.nn.relu(s_diag.sum(0)))
    return jnp.sum(
        jnp.log(1.0 + S_.sum(0)) / mu + jnp.log(1.0 + S_.sum(1)) / mu + loss_diag_1
    ) / B


if __name__ == "__main__":
    key = jax.random.PRNGKey(0)
    k1, k2, k3, k4, k5, k6 = jax.random.split(key, 6)
    mu, gama = 10.0, 0.2  # opt.mu, opt.gama

    def norm(x):
        return x / jnp.linalg.norm(x, axis=-1, keepdims=True)

    def bf16(x):
        return x.astype(jnp.bfloat16).astype(jnp.float32)

    # 1) Small shape, f32 path (tight comparison against the exact reference).
    B, D = 8, 32
    im = norm(jax.random.normal(k1, (B, D), dtype=jnp.float32))
    s = norm(jax.random.normal(k2, (B, D), dtype=jnp.float32))
    out = jax.block_until_ready(uto_loss(im, s, mu=mu, gama=gama, compute_dtype=None))
    ref = _uto_ref(im, s, mu=mu, gama=gama)
    assert jnp.allclose(out, ref, rtol=1e-3, atol=1e-5), (out, ref)

    # 2) Small shape, default bf16-matmul path (reference on bf16-rounded inputs).
    out_bf = jax.block_until_ready(uto_loss(im, s, mu=mu, gama=gama))
    ref_bf = _uto_ref(bf16(im), bf16(s), mu=mu, gama=gama)
    assert jnp.allclose(out_bf, ref_bf, rtol=1e-2, atol=1e-3), (out_bf, ref_bf)

    # 3) Multi-block grid + batch/feature padding path (T=384, grid (2,2)).
    B2, D2 = 520, 48
    im2 = norm(jax.random.normal(k3, (B2, D2), dtype=jnp.float32))
    s2 = norm(jax.random.normal(k4, (B2, D2), dtype=jnp.float32))
    out2 = jax.block_until_ready(uto_loss(im2, s2, mu=mu, gama=gama))
    ref2 = _uto_ref(bf16(im2), bf16(s2), mu=mu, gama=gama)
    assert jnp.allclose(out2, ref2, rtol=1e-2, atol=1e-3), (out2, ref2)

    # 4) Larger batch: T=1024, grid (3,3), triple-buffered s panel.
    B3, D3 = 2176, 40
    im3 = norm(jax.random.normal(k5, (B3, D3), dtype=jnp.float32))
    s3 = norm(jax.random.normal(k6, (B3, D3), dtype=jnp.float32))
    out3 = jax.block_until_ready(uto_loss(im3, s3, mu=mu, gama=gama))
    ref3 = _uto_ref(bf16(im3), bf16(s3), mu=mu, gama=gama)
    assert jnp.allclose(out3, ref3, rtol=1e-2, atol=1e-3), (out3, ref3)

    print("KERNEL_OK")
</pallas_src>

<mosaic_0001>
module attributes {stable_mosaic.version = 11 : i64} {
  func.func @_uto_kernel(%arg0: i32, %arg1: i32, %arg2: memref<128x128xf32, #tpu.memory_space<vmem>>, %arg3: memref<128x128xf32, #tpu.memory_space<vmem>>, %arg4: memref<128x1xf32, #tpu.memory_space<vmem>>, %arg5: memref<1x1x128xf32, #tpu.memory_space<vmem>>, %arg6: memref<128x1xf32, #tpu.memory_space<vmem>>) attributes {dimension_semantics = [#tpu.dimension_semantics<parallel>, #tpu.dimension_semantics<arbitrary>], iteration_bounds = array<i64: 1, 1>, scalar_prefetch = 0 : i64, scratch_operands = 0 : i64, tpu.core_type = #tpu.core_type<tc>, window_params = [{transform_indices = @transform_0, window_bounds = array<i64: 128, 128>}, {transform_indices = @transform_1, window_bounds = array<i64: 128, 128>}, {transform_indices = @transform_2, window_bounds = array<i64: 128, 1>}, {transform_indices = @transform_3, window_bounds = array<i64: 1, 1, 128>}, {transform_indices = @transform_4, window_bounds = array<i64: 128, 1>}]} {
    %c0 = arith.constant 0 : index
    %c0_0 = arith.constant 0 : index
    %0 = vector.load %arg2[%c0, %c0_0] : memref<128x128xf32, #tpu.memory_space<vmem>>, vector<128x128xf32>
    %c0_1 = arith.constant 0 : index
    %c0_2 = arith.constant 0 : index
    %1 = vector.load %arg3[%c0_1, %c0_2] : memref<128x128xf32, #tpu.memory_space<vmem>>, vector<128x128xf32>
    %cst = arith.constant dense<0.000000e+00> : vector<128x128xf32>
    %2 = tpu.matmul %0, %1, %cst {dimension_numbers = #tpu.dot_dimension_numbers<[1], [1], [0], [0], [0, 0, 1, 0], [], []>} : vector<128x128xf32>, vector<128x128xf32>, vector<128x128xf32> -> vector<128x128xf32>
    %3 = math.exp %2 : vector<128x128xf32>
    %c0_i32 = arith.constant 0 : i32
    %4 = arith.cmpi eq, %arg1, %c0_i32 : i32
    %5 = arith.extui %4 : i1 to i32
    %c0_i32_3 = arith.constant 0 : i32
    %6 = arith.cmpi ne, %5, %c0_i32_3 : i32
    scf.if %6 {
      %cst_13 = arith.constant 0.000000e+00 : f32
      %23 = vector.broadcast %cst_13 : f32 to vector<128x1xf32>
      %c0_14 = arith.constant 0 : index
      %c0_15 = arith.constant 0 : index
      %24 = vector.load %arg4[%c0_14, %c0_15] : memref<128x1xf32, #tpu.memory_space<vmem>>, vector<128x1xf32>
      tpu.vector_store %arg4[%c0_14, %c0_15], %23 {strides = array<i32>} : memref<128x1xf32, #tpu.memory_space<vmem>>, vector<128x1xf32>,
    } else {
    }
    %c0_4 = arith.constant 0 : index
    %c0_5 = arith.constant 0 : index
    %7 = vector.load %arg4[%c0_4, %c0_5] : memref<128x1xf32, #tpu.memory_space<vmem>>, vector<128x1xf32>
    %cst_6 = arith.constant dense<0.000000e+00> : vector<128xf32>
    %8 = vector.multi_reduction <add>, %3, %cst_6 [1] : vector<128x128xf32> to vector<128xf32>
    %9 = vector.shape_cast %8 : vector<128xf32> to vector<128x1xf32>
    %10 = arith.addf %7, %9 : vector<128x1xf32>
    %c0_7 = arith.constant 0 : index
    %c0_8 = arith.constant 0 : index
    %11 = vector.load %arg4[%c0_7, %c0_8] : memref<128x1xf32, #tpu.memory_space<vmem>>, vector<128x1xf32>
    tpu.vector_store %arg4[%c0_7, %c0_8], %10 {strides = array<i32>} : memref<128x1xf32, #tpu.memory_space<vmem>>, vector<128x1xf32>,
    %c128_i32 = arith.constant 128 : i32
    %12 = arith.muli %arg1, %c128_i32 : i32
    %13 = tpu.assume_multiple %12, 128 : i32
    %cst_9 = arith.constant dense<0.000000e+00> : vector<128xf32>
    %14 = vector.multi_reduction <add>, %3, %cst_9 [0] : vector<128x128xf32> to vector<128xf32>
    %15 = vector.shape_cast %14 : vector<128xf32> to vector<1x128xf32>
    %c0_10 = arith.constant 0 : index
    %c0_11 = arith.constant 0 : index
    %16 = arith.index_cast %13 : i32 to index
    %17 = vector.load %arg5[%c0_10, %c0_11, %16] : memref<1x1x128xf32, #tpu.memory_space<vmem>>, vector<1x1x128xf32>
    %18 = vector.shape_cast %17 : vector<1x1x128xf32> to vector<1x128xf32>
    %19 = vector.shape_cast %15 : vector<1x128xf32> to vector<1x1x128xf32>
    tpu.vector_store %arg5[%c0_10, %c0_11, %16], %19 {strides = array<i32>} : memref<1x1x128xf32, #tpu.memory_space<vmem>>, vector<1x1x128xf32>,
    %20 = arith.cmpi eq, %arg0, %arg1 : i32
    %21 = arith.extui %20 : i1 to i32
    %c0_i32_12 = arith.constant 0 : i32
    %22 = arith.cmpi ne, %21, %c0_i32_12 : i32
    scf.if %22 {
      %c0_13 = arith.constant 0 : index
      %c0_14 = arith.constant 0 : index
      %23 = vector.load %arg2[%c0_13, %c0_14] : memref<128x128xf32, #tpu.memory_space<vmem>>, vector<128x128xf32>
      %c0_15 = arith.constant 0 : index
      %c0_16 = arith.constant 0 : index
      %24 = vector.load %arg3[%c0_15, %c0_16] : memref<128x128xf32, #tpu.memory_space<vmem>>, vector<128x128xf32>
      %25 = arith.mulf %23, %24 : vector<128x128xf32>
      %cst_17 = arith.constant dense<0.000000e+00> : vector<128xf32>
      %26 = vector.multi_reduction <add>, %25, %cst_17 [1] : vector<128x128xf32> to vector<128xf32>
      %27 = vector.shape_cast %26 : vector<128xf32> to vector<128x1xf32>
      %c0_18 = arith.constant 0 : index
      %c0_19 = arith.constant 0 : index
      %28 = vector.load %arg6[%c0_18, %c0_19] : memref<128x1xf32, #tpu.memory_space<vmem>>, vector<128x1xf32>
      tpu.vector_store %arg6[%c0_18, %c0_19], %27 {strides = array<i32>} : memref<128x1xf32, #tpu.memory_space<vmem>>, vector<128x1xf32>,
    } else {
    }
    return
  }
  func.func @transform_0(%arg0: i32, %arg1: i32) -> (i32, i32) {
    %c0_i32 = arith.constant 0 : i32
    %c0_i32_0 = arith.constant 0 : i32
    return %arg0, %c0_i32 : i32, i32
  }
  func.func @transform_1(%arg0: i32, %arg1: i32) -> (i32, i32) {
    %c0_i32 = arith.constant 0 : i32
    %c0_i32_0 = arith.constant 0 : i32
    return %arg1, %c0_i32 : i32, i32
  }
  func.func @transform_2(%arg0: i32, %arg1: i32) -> (i32, i32) {
    %c0_i32 = arith.constant 0 : i32
    %c0_i32_0 = arith.constant 0 : i32
    return %arg0, %c0_i32 : i32, i32
  }
  func.func @transform_3(%arg0: i32, %arg1: i32) -> (i32, i32, i32) {
    %c0_i32 = arith.constant 0 : i32
    %c0_i32_0 = arith.constant 0 : i32
    %c0_i32_1 = arith.constant 0 : i32
    return %arg0, %c0_i32, %c0_i32_0 : i32, i32, i32
  }
  func.func @transform_4(%arg0: i32, %arg1: i32) -> (i32, i32) {
    %c0_i32 = arith.constant 0 : i32
    %c0_i32_0 = arith.constant 0 : i32
    return %arg0, %c0_i32 : i32, i32
  }
}

</mosaic_0001>

<bundles_post_ra>
// kernel: tpu_custom_call.1
= control target key start
LH: loop header
LB: loop body
LE: loop exit
PB: predicated region body
PF: predicated region fallthrough
CT: control target
= control target key end

     0   :  { %10 = vsyncpa [#allocation3], 0  ;;  %s973_s0 = inlined_call_operand.hbm [shape: f32[128,128], index: 0, kind: input, shape index: {}]   ;;  %s974_s1 = inlined_call_operand.hbm [shape: f32[128,128], index: 1, kind: input, shape index: {}]   ;;  %s975_s2 = inlined_call_operand.vmem [shape: f32[128,1], index: 2, kind: output, shape index: {0}]   ;;  %s976_s3 = inlined_call_operand.hbm [shape: f32[1,1,128], index: 3, kind: output, shape index: {1}]   ;;  %s977_s4 = inlined_call_operand.vmem [shape: f32[128,1], index: 4, kind: output, shape index: {2}]  }
   0x1   :  { %11 = vsyncpa [#allocation6], 0 }
   0x2   :  { %12 = vsyncpa [#allocation4], 0  ;;  %s17_s17 = sshll.u32 %s973_s0, 4  ;;  %s595_s18 = smov [#allocation2]   ;;  %s18_s17 = int_to_ptr.hbm [resolvable:$true] %s17_s17 }
   0x3   :  { %s19_s19 = sshll.u32 %s595_s18, 4  ;;  %s30_s22 = sshll.u32 %s974_s1, 4  ;;  %s20_s19 = int_to_ptr.vmem [resolvable:$true] %s19_s19  ;;  %s31_s22 = int_to_ptr.hbm [resolvable:$true] %s30_s22 }
   0x4   :  { %s596_s23 = smov 128   ;;  %s597_s24 = smov 8  }
   0x5   :  { %25 = dma.hbm_to_vmem [thread:$0]  %s18_s17, 2048, %s20_s19, [#allocation3], %s596_s23, %s596_s23, %s597_s24  }
   0x6   :  { %s598_s25 = smov [#allocation5]  }
   0x7   :  { %s32_s26 = sshll.u32 %s598_s25, 4  ;;  %s33_s26 = int_to_ptr.vmem [resolvable:$true] %s32_s26 }
   0x8   :  { %38 = dma.hbm_to_vmem [thread:$0]  %s31_s22, 2048, %s33_s26, [#allocation6], %s596_s23, %s596_s23, %s597_s24  }
   0x9   :  { %589 = dma.done.wait [#allocation3], 2048  }
   0xa   :  { %590 = vsyncadd [#allocation3], 4294965248 }
   0xb   :  { %591 = dma.done.wait [#allocation6], 2048  }
   0xc   :  { %592 = vsyncadd [#allocation6], 4294965248  ;;  %v632_v0 = vld [vmem:[#allocation5 + $0x78] sm:$0xff]  ;;  %v636_v1 = vld [vmem:[#allocation5 + $0x70] sm:$0xff]  ;;  %vm180_vm0 = vcmask 7168   ;;  %s600_s13 = smov [#allocation7]  }
   0xd   :  { %79 = vmatpush.xpose.msra.mxu0 %v632_v0  ;;  %433 = vmatpush.xpose.msra.mxu3 %v632_v0  ;;  %v642_v2 = vld [vmem:[#allocation5 + $0x68] sm:$0xff]  ;;  %v648_v3 = vld [vmem:[#allocation5 + $0x60] sm:$0xff]  ;;  %v654_v4 = vld [vmem:[#allocation5 + $0x58] sm:$0xff]  ;;  %s411_s14 = sshll.u32 %s600_s13, 4  ;;  %s413_s17 = sshll.u32 %s976_s3, 4  ;;  %s412_s14 = int_to_ptr.vmem [resolvable:$true] %s411_s14  ;;  %s414_s17 = int_to_ptr.hbm [resolvable:$true] %s413_s17 }
   0xe   :  { %431 = vmatpush.xpose.msra.mxu1 %v632_v0  ;;  %432 = vmatpush.xpose.msra.mxu2 %v632_v0  ;;  %v660_v5 = vld [vmem:[#allocation5 + $0x50] sm:$0xff]  ;;  %v666_v6 = vld [vmem:[#allocation5 + $0x48] sm:$0xff]  ;;  %v672_v7 = vld [vmem:[#allocation5 + $0x40] sm:$0xff] }
   0xf   :  { %v678_v8 = vld [vmem:[#allocation5 + $0x38] sm:$0xff]  ;;  %v684_v9 = vld [vmem:[#allocation5 + $0x30] sm:$0xff]  ;;  %v68_v10 = vld [vmem:[#allocation5 + $0x28] sm:$0xff] }
  0x10   :  { %v67_v11 = vld [vmem:[#allocation5 + $0x20] sm:$0xff]  ;;  %v66_v12 = vld [vmem:[#allocation5 + $0x18] sm:$0xff]  ;;  %v65_v13 = vld [vmem:[#allocation5 + $0x10] sm:$0xff] }
  0x11   :  { %80 = vmatpush.xpose.msra.mxu0 %v636_v1  ;;  %436 = vmatpush.xpose.msra.mxu3 %v636_v1  ;;  %v64_v14 = vld [vmem:[#allocation5 + $0x8] sm:$0xff]  ;;  %v63_v15 = vld [vmem:[#allocation5] sm:$0xff]  ;;  %v49_v18 = vld [vmem:[#allocation2 + $0x10] sm:$0xff] }
  0x12   :  { %434 = vmatpush.xpose.msra.mxu1 %v636_v1  ;;  %435 = vmatpush.xpose.msra.mxu2 %v636_v1  ;;  %v47_v16 = vld [vmem:[#allocation2] sm:$0xff]  ;;  %v48_v17 = vld [vmem:[#allocation2 + $0x8] sm:$0xff]  ;;  %v342_v19 = vmul.f32 %v65_v13, %v49_v18  ;;  %v50_v26 = vld [vmem:[#allocation2 + $0x18] sm:$0xff] }
  0x13   :  { %v341_v20 = vmul.f32 %v64_v14, %v48_v17  ;;  %v340_v21 = vmul.f32 %v63_v15, %v47_v16  ;;  %v59_v22 = vld [vmem:[#allocation2 + $0x60] sm:$0xff]  ;;  %v52_v25 = vld [vmem:[#allocation2 + $0x28] sm:$0xff]  ;;  %v343_v29 = vmul.f32 %v66_v12, %v50_v26  ;;  %v54_v32 = vld [vmem:[#allocation2 + $0x38] sm:$0xff] }
  0x14   :  { %360 = vadd.xlane.f32.xlu0 %v342_v19  ;;  %v51_v23 = vld [vmem:[#allocation2 + $0x20] sm:$0xff]  ;;  %v345_v27 = vmul.f32 %v68_v10, %v52_v25  ;;  %v692_v30 = vld [vmem:[#allocation2 + $0x68] sm:$0xff]  ;;  %v53_v33 = vld [vmem:[#allocation2 + $0x30] sm:$0xff]  ;;  %v347_v35 = vmul.f32 %v678_v8, %v54_v32  ;;  %v352_v44 = vmul.f32 %v648_v3, %v59_v22 }
  0x15   :  { %81 = vmatpush.xpose.msra.mxu0 %v642_v2  ;;  %439 = vmatpush.xpose.msra.mxu3 %v642_v2  ;;  %v55_v24 = vld [vmem:[#allocation2 + $0x40] sm:$0xff]  ;;  %v344_v28 = vmul.f32 %v67_v11, %v51_v23  ;;  %v56_v31 = vld [vmem:[#allocation2 + $0x48] sm:$0xff]  ;;  %v346_v36 = vmul.f32 %v684_v9, %v53_v33  ;;  %v698_v37 = vld [vmem:[#allocation2 + $0x70] sm:$0xff] }
  0x16   :  { %437 = vmatpush.xpose.msra.mxu1 %v642_v2  ;;  %438 = vmatpush.xpose.msra.mxu2 %v642_v2  ;;  %v348_v34 = vmul.f32 %v672_v7, %v55_v24  ;;  %v57_v38 = vld [vmem:[#allocation2 + $0x50] sm:$0xff]  ;;  %v701_v39 = vld [vmem:[#allocation2 + $0x78] sm:$0xff]  ;;  %v349_v43 = vmul.f32 %v666_v6, %v56_v31 }
  0x17   :  { %358 = vadd.xlane.f32.xlu2 %v341_v20  ;;  %356 = vadd.xlane.f32.xlu1 %v340_v21  ;;  %v58_v40 = vld [vmem:[#allocation2 + $0x58] sm:$0xff]  ;;  %v350_v42 = vmul.f32 %v660_v5, %v57_v38 }
  0x18   :  { %v351_v41 = vmul.f32 %v654_v4, %v58_v40 }
  0x19   :  { %82 = vmatpush.xpose.msra.mxu0 %v648_v3  ;;  %442 = vmatpush.xpose.msra.mxu3 %v648_v3 }
  0x1a   :  { %440 = vmatpush.xpose.msra.mxu1 %v648_v3  ;;  %441 = vmatpush.xpose.msra.mxu2 %v648_v3 }
  0x1c   :  { %366 = vadd.xlane.f32.xlu0 %v345_v27 }
  0x1d   :  { %83 = vmatpush.xpose.msra.mxu0 %v654_v4  ;;  %445 = vmatpush.xpose.msra.mxu3 %v654_v4 }
  0x1e   :  { %443 = vmatpush.xpose.msra.mxu1 %v654_v4  ;;  %444 = vmatpush.xpose.msra.mxu2 %v654_v4 }
  0x1f   :  { %364 = vadd.xlane.f32.xlu2 %v344_v28  ;;  %362 = vadd.xlane.f32.xlu1 %v343_v29 }
  0x21   :  { %84 = vmatpush.xpose.msra.mxu0 %v660_v5  ;;  %448 = vmatpush.xpose.msra.mxu3 %v660_v5 }
  0x22   :  { %446 = vmatpush.xpose.msra.mxu1 %v660_v5  ;;  %447 = vmatpush.xpose.msra.mxu2 %v660_v5 }
  0x24   :  { %372 = vadd.xlane.f32.xlu0 %v348_v34 }
  0x25   :  { %85 = vmatpush.xpose.msra.mxu0 %v666_v6  ;;  %451 = vmatpush.xpose.msra.mxu3 %v666_v6 }
  0x26   :  { %449 = vmatpush.xpose.msra.mxu1 %v666_v6  ;;  %450 = vmatpush.xpose.msra.mxu2 %v666_v6 }
  0x27   :  { %370 = vadd.xlane.f32.xlu2 %v347_v35  ;;  %368 = vadd.xlane.f32.xlu1 %v346_v36 }
  0x29   :  { %86 = vmatpush.xpose.msra.mxu0 %v672_v7  ;;  %454 = vmatpush.xpose.msra.mxu3 %v672_v7 }
  0x2a   :  { %452 = vmatpush.xpose.msra.mxu1 %v672_v7  ;;  %453 = vmatpush.xpose.msra.mxu2 %v672_v7 }
  0x2c   :  { %378 = vadd.xlane.f32.xlu0 %v351_v41 }
  0x2d   :  { %87 = vmatpush.xpose.msra.mxu0 %v678_v8  ;;  %457 = vmatpush.xpose.msra.mxu3 %v678_v8 }
  0x2e   :  { %455 = vmatpush.xpose.msra.mxu1 %v678_v8  ;;  %456 = vmatpush.xpose.msra.mxu2 %v678_v8 }
  0x2f   :  { %376 = vadd.xlane.f32.xlu2 %v350_v42  ;;  %374 = vadd.xlane.f32.xlu1 %v349_v43 }
  0x31   :  { %88 = vmatpush.xpose.msra.mxu0 %v684_v9  ;;  %460 = vmatpush.xpose.msra.mxu3 %v684_v9 }
  0x32   :  { %458 = vmatpush.xpose.msra.mxu1 %v684_v9  ;;  %459 = vmatpush.xpose.msra.mxu2 %v684_v9 }
  0x35   :  { %89 = vmatpush.xpose.msra.mxu0 %v68_v10  ;;  %463 = vmatpush.xpose.msra.mxu3 %v68_v10 }
  0x36   :  { %461 = vmatpush.xpose.msra.mxu1 %v68_v10  ;;  %462 = vmatpush.xpose.msra.mxu2 %v68_v10 }
  0x37   :  { %380 = vadd.xlane.f32.xlu1 %v352_v44 }
  0x39   :  { %90 = vmatpush.xpose.msra.mxu0 %v67_v11  ;;  %466 = vmatpush.xpose.msra.mxu3 %v67_v11 }
  0x3a   :  { %464 = vmatpush.xpose.msra.mxu1 %v67_v11  ;;  %465 = vmatpush.xpose.msra.mxu2 %v67_v11 }
  0x3d   :  { %91 = vmatpush.xpose.msra.mxu0 %v66_v12  ;;  %469 = vmatpush.xpose.msra.mxu3 %v66_v12 }
  0x3e   :  { %467 = vmatpush.xpose.msra.mxu1 %v66_v12  ;;  %468 = vmatpush.xpose.msra.mxu2 %v66_v12 }
  0x41   :  { %92 = vmatpush.xpose.msra.mxu0 %v65_v13  ;;  %472 = vmatpush.xpose.msra.mxu3 %v65_v13 }
  0x42   :  { %470 = vmatpush.xpose.msra.mxu1 %v65_v13  ;;  %471 = vmatpush.xpose.msra.mxu2 %v65_v13 }
  0x45   :  { %93 = vmatpush.xpose.msra.mxu0 %v64_v14  ;;  %475 = vmatpush.xpose.msra.mxu3 %v64_v14 }
  0x46   :  { %473 = vmatpush.xpose.msra.mxu1 %v64_v14  ;;  %474 = vmatpush.xpose.msra.mxu2 %v64_v14 }
  0x49   :  { %94 = vmatpush.xpose.msra.mxu0 %v63_v15  ;;  %478 = vmatpush.xpose.msra.mxu3 %v63_v15 }
  0x4a   :  { %476 = vmatpush.xpose.msra.mxu1 %v63_v15  ;;  %477 = vmatpush.xpose.msra.mxu2 %v63_v15 }
  0x4c   :  { %95 = vmatmul.f32.vlgmr.msra.gmra.mxu0 %v47_v16  ;;  %131 = vmatmul.f32.vlgmr.msra.gmra.mxu3 %v59_v22 }
  0x4d   :  { %107 = vmatmul.f32.vlgmr.msra.gmra.mxu1 %v51_v23  ;;  %119 = vmatmul.f32.vlgmr.msra.gmra.mxu2 %v55_v24 }
  0x54   :  { %98 = vmatmul.f32.gmra.mxu0 %v48_v17  ;;  %134 = vmatmul.f32.gmra.mxu3 %v692_v30 }
  0x55   :  { %110 = vmatmul.f32.gmra.mxu1 %v52_v25  ;;  %122 = vmatmul.f32.gmra.mxu2 %v56_v31 }
  0x5c   :  { %101 = vmatmul.f32.gmra.mxu0 %v49_v18  ;;  %137 = vmatmul.f32.gmra.mxu3 %v698_v37 }
  0x5d   :  { %113 = vmatmul.f32.gmra.mxu1 %v53_v33  ;;  %125 = vmatmul.f32.gmra.mxu2 %v57_v38 }
  0x64   :  { %104 = vmatmul.f32.gmra.mxu0 %v50_v26  ;;  %140 = vmatmul.f32.gmra.mxu3 %v701_v39 }
  0x65   :  { %116 = vmatmul.f32.gmra.mxu1 %v54_v32  ;;  %128 = vmatmul.f32.gmra.mxu2 %v58_v40 }
  0x87   :  { %v361_v26 = vpop.xlane.xlu0 %360 }
  0x88   :  { %390 = vst.msk [vmem:[%s977_s4 + $0x10] sm:$0xff] %vm180_vm0, %v361_v26 }
  0x8a   :  { %v359_v27 = vpop.xlane.xlu2 %358  ;;  %v357_v29 = vpop.xlane.xlu1 %356 }
  0x8b   :  { %389 = vst.msk [vmem:[%s977_s4 + $0x8] sm:$0xff] %vm180_vm0, %v359_v27 }
  0x8c   :  { %388 = vst.msk [vmem:[%s977_s4] sm:$0xff] %vm180_vm0, %v357_v29 }
  0x8f   :  { %v367_v42 = vpop.xlane.xlu0 %366 }
  0x90   :  { %393 = vst.msk [vmem:[%s977_s4 + $0x28] sm:$0xff] %vm180_vm0, %v367_v42 }
  0x92   :  { %v365_v43 = vpop.xlane.xlu2 %364  ;;  %v363_v44 = vpop.xlane.xlu1 %362 }
  0x93   :  { %392 = vst.msk [vmem:[%s977_s4 + $0x20] sm:$0xff] %vm180_vm0, %v365_v43 }
  0x94   :  { %391 = vst.msk [vmem:[%s977_s4 + $0x18] sm:$0xff] %vm180_vm0, %v363_v44 }
  0xc9   :  { %v96_v45 = vpop.f32.mrf.mxu0 }
  0xca   :  { %v144_v46 = vmul.f32 1.442695, %v96_v45  ;;  %v108_v47 = vpop.f32.mrf.mxu1 }
  0xcb   :  { %v152_v48 = vmul.f32 1.442695, %v108_v47 }
  0xcc   :  { %485 = vpow2.f32 %v144_v46 }
  0xcd   :  { %487 = vpow2.f32 %v152_v48 }
  0xcf   :  { %v132_v49 = vpop.f32.mrf.mxu3 }
  0xd0   :  { %v168_v50 = vmul.f32 1.442695, %v132_v49  ;;  %v120_v51 = vpop.f32.mrf.mxu2 }
  0xd1   :  { %v99_v52 = vpop.f32.mrf.mxu0  ;;  %v160_v53 = vmul.f32 1.442695, %v120_v51 }
  0xd2   :  { %v486_v54 = vpop.eup %485  ;;  %v111_v55 = vpop.f32.mrf.mxu1  ;;  %v146_v58 = vmul.f32 1.442695, %v99_v52 }
  0xd3   :  { %v708_v56 = vpop.eup %487  ;;  %213 = vadd.xlane.f32.xlu0 %v486_v54  ;;  %489 = vpow2.f32 %v160_v53  ;;  %v154_v63 = vmul.f32 1.442695, %v111_v55  ;;  %v373_v52 = vpop.xlane.xlu0 %372 }
  0xd4   :  { %491 = vpow2.f32 %v168_v50  ;;  %221 = vadd.xlane.f32.xlu2 %v708_v56  ;;  %v353_v50 = vmul.f32 %v642_v2, %v692_v30  ;;  %396 = vst.msk [vmem:[%s977_s4 + $0x40] sm:$0xff] %vm180_vm0, %v373_v52  ;;  %v371_v53 = vpop.xlane.xlu2 %370 }
  0xd5   :  { %395 = vst.msk [vmem:[%s977_s4 + $0x38] sm:$0xff] %vm180_vm0, %v371_v53 }
  0xd7   :  { %v135_v57 = vpop.f32.mrf.mxu3 }
  0xd8   :  { %v170_v59 = vmul.f32 1.442695, %v135_v57  ;;  %v123_v60 = vpop.f32.mrf.mxu2 }
  0xd9   :  { %v711_v61 = vpop.eup %489  ;;  %v102_v62 = vpop.f32.mrf.mxu0  ;;  %v162_v6 = vmul.f32 1.442695, %v123_v60  ;;  %v355_v60 = vmul.f32 %v632_v0, %v701_v39 }
  0xda   :  { %v713_v3 = vpop.eup %491  ;;  %493 = vpow2.f32 %v170_v59  ;;  %v114_v4 = vpop.f32.mrf.mxu1  ;;  %v148_v5 = vmul.f32 1.442695, %v102_v62  ;;  %v599_v62 = vmov 0.0  }
  0xdb   :  { %237 = vadd.xlane.f32.xlu0 %v713_v3  ;;  %495 = vpow2.f32 %v146_v58  ;;  %v156_v15 = vmul.f32 1.442695, %v114_v4  ;;  %181 = vst.msk [vmem:[%s975_s2] sm:$0xff] %vm180_vm0, %v599_v62 }
  0xdc   :  { %229 = vadd.xlane.f32.xlu2 %v711_v61  ;;  %497 = vpow2.f32 %v154_v63  ;;  %182 = vst.msk [vmem:[%s975_s2 + $0x8] sm:$0xff] %vm180_vm0, %v599_v62  ;;  %v379_v63 = vpop.xlane.xlu0 %378 }
  0xdd   :  { %499 = vpow2.f32 %v148_v5  ;;  %183 = vst.msk [vmem:[%s975_s2 + $0x10] sm:$0xff] %vm180_vm0, %v599_v62 }
  0xde   :  { %501 = vpow2.f32 %v162_v6  ;;  %184 = vst.msk [vmem:[%s975_s2 + $0x18] sm:$0xff] %vm180_vm0, %v599_v62 }
  0xdf   :  { %v138_v7 = vpop.f32.mrf.mxu3  ;;  %185 = vst.msk [vmem:[%s975_s2 + $0x20] sm:$0xff] %vm180_vm0, %v599_v62 }
  0xe0   :  { %v717_v8 = vpop.eup %493  ;;  %v126_v9 = vpop.f32.mrf.mxu2  ;;  %v172_v10 = vmul.f32 1.442695, %v138_v7  ;;  %186 = vst.msk [vmem:[%s975_s2 + $0x28] sm:$0xff] %vm180_vm0, %v599_v62 }
  0xe1   :  { %239 = vadd.xlane.f32.xlu1 %v717_v8  ;;  %v105_v11 = vpop.f32.mrf.mxu0  ;;  %v496_v12 = vpop.eup %495  ;;  %v164_v17 = vmul.f32 1.442695, %v126_v9  ;;  %187 = vst.msk [vmem:[%s975_s2 + $0x30] sm:$0xff] %vm180_vm0, %v599_v62 }
  0xe2   :  { %v150_v13 = vmul.f32 1.442695, %v105_v11  ;;  %v498_v14 = vpop.eup %497  ;;  %v117_v16 = vpop.f32.mrf.mxu1  ;;  %503 = vpow2.f32 %v172_v10  ;;  %v279_v20 = vadd.f32 %v496_v12, %v486_v54  ;;  %188 = vst.msk [vmem:[%s975_s2 + $0x38] sm:$0xff] %vm180_vm0, %v599_v62  ;;  %v197_v6 = vld [vmem:[%s975_s2] sm:$0xff] }
  0xe3   :  { %215 = vadd.xlane.f32.xlu0 %v496_v12  ;;  %v500_v18 = vpop.eup %499  ;;  %v158_v19 = vmul.f32 1.442695, %v117_v16  ;;  %v369_v54 = vpop.xlane.xlu1 %368  ;;  %189 = vst.msk [vmem:[%s975_s2 + $0x40] sm:$0xff] %vm180_vm0, %v599_v62 }
  0xe4   :  { %505 = vpow2.f32 %v150_v13  ;;  %223 = vadd.xlane.f32.xlu2 %v498_v14  ;;  %v502_v21 = vpop.eup %501  ;;  %v280_v24 = vadd.f32 %v500_v18, %v279_v20  ;;  %394 = vst.msk [vmem:[%s977_s4 + $0x30] sm:$0xff] %vm180_vm0, %v369_v54  ;;  %v198_v20 = vld [vmem:[%s975_s2 + $0x8] sm:$0xff]  ;;  %v199_v27 = vld [vmem:[%s975_s2 + $0x10] sm:$0xff] }
  0xe5   :  { %507 = vpow2.f32 %v156_v15  ;;  %190 = vst.msk [vmem:[%s975_s2 + $0x48] sm:$0xff] %vm180_vm0, %v599_v62 }
  0xe6   :  { %509 = vpow2.f32 %v164_v17  ;;  %191 = vst.msk [vmem:[%s975_s2 + $0x50] sm:$0xff] %vm180_vm0, %v599_v62  ;;  %v201_v7 = vld [vmem:[%s975_s2 + $0x20] sm:$0xff] }
  0xe7   :  { %511 = vpow2.f32 %v158_v19  ;;  %v141_v32 = vpop.f32.mrf.mxu3  ;;  %192 = vst.msk [vmem:[%s975_s2 + $0x58] sm:$0xff] %vm180_vm0, %v599_v62 }
  0xe8   :  { %v129_v22 = vpop.f32.mrf.mxu2  ;;  %v504_v23 = vpop.eup %503  ;;  %v174_v36 = vmul.f32 1.442695, %v141_v32  ;;  %193 = vst.msk [vmem:[%s975_s2 + $0x60] sm:$0xff] %vm180_vm0, %v599_v62 }
  0xe9   :  { %217 = vadd.xlane.f32.xlu1 %v500_v18  ;;  %v166_v25 = vmul.f32 1.442695, %v129_v22  ;;  %194 = vst.msk [vmem:[%s975_s2 + $0x68] sm:$0xff] %vm180_vm0, %v599_v62  ;;  %v202_v22 = vld [vmem:[%s975_s2 + $0x28] sm:$0xff] }
  0xea   :  { %v506_v28 = vpop.eup %505  ;;  %195 = vst.msk [vmem:[%s975_s2 + $0x70] sm:$0xff] %vm180_vm0, %v599_v62  ;;  %v205_v13 = vld [vmem:[%s975_s2 + $0x40] sm:$0xff] }
  0xeb   :  { %v281_v31 = vadd.f32 %v506_v28, %v280_v24  ;;  %231 = vadd.xlane.f32.xlu0 %v502_v21  ;;  %v508_v33 = vpop.eup %507  ;;  %513 = vpow2.f32 %v166_v25  ;;  %196 = vst.msk [vmem:[%s975_s2 + $0x78] sm:$0xff] %vm180_vm0, %v599_v62  ;;  %v375_v4 = vpop.xlane.xlu1 %374 }
  0xec   :  { %241 = vadd.xlane.f32.xlu2 %v504_v23  ;;  %v510_v35 = vpop.eup %509  ;;  %515 = vpow2.f32 %v174_v36  ;;  %399 = vst.msk [vmem:[%s977_s4 + $0x58] sm:$0xff] %vm180_vm0, %v379_v63  ;;  %v206_v29 = vld [vmem:[%s975_s2 + $0x48] sm:$0xff] }
  0xed   :  { %v282_v34 = vadd.f32 %v708_v56, %v281_v31  ;;  %v512_v40 = vpop.eup %511  ;;  %v354_v56 = vmul.f32 %v636_v1, %v698_v37  ;;  %397 = vst.msk [vmem:[%s977_s4 + $0x48] sm:$0xff] %vm180_vm0, %v375_v4 }
  0xee   :  { %v208_v43 = vld [vmem:[%s975_s2 + $0x58] sm:$0xff] }
  0xef   :  { %v283_v38 = vadd.f32 %v498_v14, %v282_v34  ;;  %v209_v12 = vld [vmem:[%s975_s2 + $0x60] sm:$0xff] }
  0xf0   :  { %v210_v18 = vld [vmem:[%s975_s2 + $0x68] sm:$0xff] }
  0xf1   :  { %v284_v41 = vadd.f32 %v508_v33, %v283_v38  ;;  %233 = vadd.xlane.f32.xlu1 %v510_v35  ;;  %v514_v45 = vpop.eup %513  ;;  %v211_v32 = vld [vmem:[%s975_s2 + $0x70] sm:$0xff] }
  0xf2   :  { %v516_v49 = vpop.eup %515  ;;  %v207_v38 = vld [vmem:[%s975_s2 + $0x50] sm:$0xff] }
  0xf3   :  { %v285_v46 = vadd.f32 %v512_v40, %v284_v41  ;;  %225 = vadd.xlane.f32.xlu0 %v508_v33  ;;  %v381_v5 = vpop.xlane.xlu1 %380  ;;  %v203_v41 = vld [vmem:[%s975_s2 + $0x30] sm:$0xff] }
  0xf4   :  { %235 = vadd.xlane.f32.xlu2 %v514_v45  ;;  %400 = vst.msk [vmem:[%s977_s4 + $0x60] sm:$0xff] %vm180_vm0, %v381_v5 }
  0xf5   :  { %v286_v47 = vadd.f32 %v711_v61, %v285_v46 }
  0xf7   :  { %v287_v48 = vadd.f32 %v502_v21, %v286_v47 }
  0xf9   :  { %v288_v51 = vadd.f32 %v510_v35, %v287_v48  ;;  %219 = vadd.xlane.f32.xlu1 %v506_v28  ;;  %v200_v48 = vld [vmem:[%s975_s2 + $0x18] sm:$0xff] }
  0xfb   :  { %v289_v55 = vadd.f32 %v514_v45, %v288_v51  ;;  %243 = vadd.xlane.f32.xlu0 %v516_v49 }
  0xfc   :  { %382 = vadd.xlane.f32.xlu2 %v353_v50  ;;  %v212_v50 = vld [vmem:[%s975_s2 + $0x78] sm:$0xff] }
  0xfd   :  { %v290_v2 = vadd.f32 %v713_v3, %v289_v55  ;;  %v377_v3 = vpop.xlane.xlu2 %376  ;;  %v204_v55 = vld [vmem:[%s975_s2 + $0x38] sm:$0xff] }
  0xfe   :  { %398 = vst.msk [vmem:[%s977_s4 + $0x50] sm:$0xff] %vm180_vm0, %v377_v3 }
  0xff   :  { %v291_v30 = vadd.f32 %v717_v8, %v290_v2 }
 0x101   :  { %v292_v57 = vadd.f32 %v504_v23, %v291_v30  ;;  %227 = vadd.xlane.f32.xlu1 %v512_v40 }
 0x103   :  { %v293_v58 = vadd.f32 %v516_v49, %v292_v57  ;;  %384 = vadd.xlane.f32.xlu0 %v354_v56 }
 0x105   :  { %v294_v59 = vrot.slane %v293_v58, 4 }
 0x107   :  { %v295_v61 = vadd.f32 %v294_v59, %v293_v58 }
 0x109   :  { %386 = vadd.xlane.f32.xlu1 %v355_v60  ;;  %v296_v1 = vrot.slane %v295_v61, 2 }
 0x10b   :  { %v297_v0 = vadd.f32 %v296_v1, %v295_v61 }
 0x10d   :  { %v298_v37 = vrot.slane %v297_v0, 1 }
 0x10f   :  { %v299_v39 = vadd.f32 %v298_v37, %v297_v0 }
 0x111   :  { %303 = vst [vmem:[#allocation7] sm:$0x1] %v299_v39 }
 0x112   :  { %416 = dma.vmem_to_hbm [thread:$0]  %s412_s14, 16, %s414_s17, [#allocation4]  }
 0x146   :  { %v214_v8 = vpop.xlane.xlu0 %213 }
 0x147   :  { %v245_v9 = vadd.f32 %v214_v8, %v197_v6  ;;  %v222_v10 = vpop.xlane.xlu2 %221 }
 0x148   :  { %v249_v11 = vadd.f32 %v222_v10, %v201_v7 }
 0x149   :  { %262 = vst.msk [vmem:[%s975_s2] sm:$0xff] %vm180_vm0, %v245_v9 }
 0x14a   :  { %266 = vst.msk [vmem:[%s975_s2 + $0x20] sm:$0xff] %vm180_vm0, %v249_v11 }
 0x14e   :  { %v238_v14 = vpop.xlane.xlu0 %237 }
 0x14f   :  { %v257_v15 = vadd.f32 %v238_v14, %v209_v12  ;;  %v230_v16 = vpop.xlane.xlu2 %229 }
 0x150   :  { %v253_v17 = vadd.f32 %v230_v16, %v205_v13 }
 0x151   :  { %274 = vst.msk [vmem:[%s975_s2 + $0x60] sm:$0xff] %vm180_vm0, %v257_v15 }
 0x152   :  { %270 = vst.msk [vmem:[%s975_s2 + $0x40] sm:$0xff] %vm180_vm0, %v253_v17 }
 0x154   :  { %v240_v19 = vpop.xlane.xlu1 %239 }
 0x155   :  { %v258_v21 = vadd.f32 %v240_v19, %v210_v18 }
 0x156   :  { %v216_v23 = vpop.xlane.xlu0 %215 }
 0x157   :  { %275 = vst.msk [vmem:[%s975_s2 + $0x68] sm:$0xff] %vm180_vm0, %v258_v21  ;;  %v246_v24 = vadd.f32 %v216_v23, %v198_v20  ;;  %v224_v25 = vpop.xlane.xlu2 %223 }
 0x158   :  { %v250_v26 = vadd.f32 %v224_v25, %v202_v22 }
 0x159   :  { %263 = vst.msk [vmem:[%s975_s2 + $0x8] sm:$0xff] %vm180_vm0, %v246_v24 }
 0x15a   :  { %267 = vst.msk [vmem:[%s975_s2 + $0x28] sm:$0xff] %vm180_vm0, %v250_v26 }
 0x15c   :  { %v218_v28 = vpop.xlane.xlu1 %217 }
 0x15d   :  { %v247_v31 = vadd.f32 %v218_v28, %v199_v27 }
 0x15e   :  { %v232_v33 = vpop.xlane.xlu0 %231 }
 0x15f   :  { %264 = vst.msk [vmem:[%s975_s2 + $0x10] sm:$0xff] %vm180_vm0, %v247_v31  ;;  %v254_v34 = vadd.f32 %v232_v33, %v206_v29  ;;  %v242_v35 = vpop.xlane.xlu2 %241 }
 0x160   :  { %v259_v36 = vadd.f32 %v242_v35, %v211_v32 }
 0x161   :  { %271 = vst.msk [vmem:[%s975_s2 + $0x48] sm:$0xff] %vm180_vm0, %v254_v34 }
 0x162   :  { %276 = vst.msk [vmem:[%s975_s2 + $0x70] sm:$0xff] %vm180_vm0, %v259_v36 }
 0x164   :  { %v234_v40 = vpop.xlane.xlu1 %233 }
 0x165   :  { %v255_v42 = vadd.f32 %v234_v40, %v207_v38 }
 0x166   :  { %v226_v44 = vpop.xlane.xlu0 %225 }
 0x167   :  { %272 = vst.msk [vmem:[%s975_s2 + $0x50] sm:$0xff] %vm180_vm0, %v255_v42  ;;  %v251_v45 = vadd.f32 %v226_v44, %v203_v41  ;;  %v236_v46 = vpop.xlane.xlu2 %235 }
 0x168   :  { %v256_v47 = vadd.f32 %v236_v46, %v208_v43 }
 0x169   :  { %268 = vst.msk [vmem:[%s975_s2 + $0x30] sm:$0xff] %vm180_vm0, %v251_v45 }
 0x16a   :  { %273 = vst.msk [vmem:[%s975_s2 + $0x58] sm:$0xff] %vm180_vm0, %v256_v47 }
 0x16c   :  { %v220_v49 = vpop.xlane.xlu1 %219 }
 0x16d   :  { %v248_v51 = vadd.f32 %v220_v49, %v200_v48 }
 0x16e   :  { %v244_v52 = vpop.xlane.xlu0 %243 }
 0x16f   :  { %265 = vst.msk [vmem:[%s975_s2 + $0x18] sm:$0xff] %vm180_vm0, %v248_v51  ;;  %v260_v53 = vadd.f32 %v244_v52, %v212_v50  ;;  %v383_v54 = vpop.xlane.xlu2 %382 }
 0x170   :  { %401 = vst.msk [vmem:[%s977_s4 + $0x68] sm:$0xff] %vm180_vm0, %v383_v54 }
 0x171   :  { %277 = vst.msk [vmem:[%s975_s2 + $0x78] sm:$0xff] %vm180_vm0, %v260_v53 }
 0x174   :  { %v228_v2 = vpop.xlane.xlu1 %227 }
 0x175   :  { %v252_v30 = vadd.f32 %v228_v2, %v204_v55 }
 0x176   :  { %v385_v56 = vpop.xlane.xlu0 %384 }
 0x177   :  { %269 = vst.msk [vmem:[%s975_s2 + $0x38] sm:$0xff] %vm180_vm0, %v252_v30 }
 0x178   :  { %402 = vst.msk [vmem:[%s977_s4 + $0x70] sm:$0xff] %vm180_vm0, %v385_v56 }
 0x17c   :  { %v387_v57 = vpop.xlane.xlu1 %386 }
 0x17d   :  { %403 = vst.msk [vmem:[%s977_s4 + $0x78] sm:$0xff] %vm180_vm0, %v387_v57 }
 0x17e   :  { %593 = dma.done.wait [#allocation4], 16  }
 0x17f   :  { %594 = vsyncadd [#allocation4], 4294967280 }
 0x180   :  { %427 = vsyncpa [#allocation3], 1 }
 0x181   :  { %428 = vsyncpa [#allocation6], 1 }
 0x182   :  { %429 = vsyncpa [#allocation4], 1 }

</bundles_post_ra>
